<compile_context>
chip_gen: v6e
topology: v6e:2x2x1
jax: 0.10.0
libtpu: 0.0.40
codegen_flags: <defaults>
</compile_context>

<pallas_src>
import math

import jax
import jax.numpy as jnp
from jax.experimental import pallas as pl
from jax.experimental.pallas import tpu as pltpu

_MiB = 1024 * 1024


# ----------------------------------------------------------------------------
# Kernels
# ----------------------------------------------------------------------------
def _make_single_kernel(k):
    # x_ref block: (nb, HW/k, k*C); gamma: (1,1,C); beta: (1,1,k*C).
    def kernel(x_ref, gamma_ref, beta_ref, o_ref):
        xf = x_ref[...].astype(jnp.float32)                     # read+cast once
        ss = jnp.sum(xf * xf, axis=1, keepdims=True)            # (nb, 1, k*C)
        if k > 1:
            # fold the k lane-packed sub-groups back to per-channel sums
            ss = ss.reshape(ss.shape[0], k, -1).sum(axis=1, keepdims=True)
        gx = jnp.sqrt(ss)                                        # (nb, 1, C)
        denom = jnp.mean(gx, axis=-1, keepdims=True) + 1e-6     # (nb, 1, 1)
        nx = gx * pl.reciprocal(denom, approx=False)            # (nb, 1, C)
        scale = gamma_ref[...].astype(jnp.float32) * nx + 1.0   # (nb, 1, C)
        if k > 1:
            scale = jnp.tile(scale, (1, 1, k))                  # (nb, 1, k*C)
        o_ref[...] = (xf * scale + beta_ref[...].astype(jnp.float32)).astype(o_ref.dtype)

    return kernel


def _make_reduce_kernel(k):
    # Grid: (N, num_t), t is the spatial-reduction axis ("arbitrary").
    # Accumulates packed sum-of-squares directly into the resident output block,
    # then finalizes to the fused scale = gamma*nx + 1 (lane-tiled) on the last t.
    def kernel(x_ref, gamma_ref, o_scale_ref):
        t = pl.program_id(1)

        @pl.when(t == 0)
        def _():
            o_scale_ref[...] = jnp.zeros_like(o_scale_ref)

        xf = x_ref[...].astype(jnp.float32)
        o_scale_ref[...] += jnp.sum(xf * xf, axis=1, keepdims=True)   # (1,1,k*C)

        @pl.when(t == pl.num_programs(1) - 1)
        def _():
            ss = o_scale_ref[...]
            if k > 1:
                ss = ss.reshape(1, k, -1).sum(axis=1, keepdims=True)  # (1,1,C)
            gx = jnp.sqrt(ss)
            denom = jnp.mean(gx, axis=-1, keepdims=True) + 1e-6
            nx = gx * pl.reciprocal(denom, approx=False)
            scale = gamma_ref[...].astype(jnp.float32) * nx + 1.0
            if k > 1:
                scale = jnp.tile(scale, (1, 1, k))                    # (1,1,k*C)
            o_scale_ref[...] = scale

    return kernel


def _grn_apply_kernel(x_ref, scale_ref, beta_ref, o_ref):
    # x_ref block: (1, th, k*C); scale/beta: (1, 1, k*C)
    o_ref[...] = (x_ref[...].astype(jnp.float32) * scale_ref[...]
                  + beta_ref[...].astype(jnp.float32)).astype(o_ref.dtype)


# ----------------------------------------------------------------------------
# Wrapper helpers
# ----------------------------------------------------------------------------
def _vmem_capacity_bytes():
    try:
        info = pltpu.get_tpu_info()
        cap = getattr(info, "vmem_capacity_bytes", None)
        if cap:
            return int(cap)
    except Exception:
        pass
    return 64 * _MiB   # conservative (v7x per-TC); safe on v5e/v6e as well


def _pick_spatial_tile(hw, c, itemsize, target_bytes, sub):
    """Largest divisor of hw that is a multiple of `sub` (or == hw) whose
    (tile, c) block fits target_bytes.  None if no such divisor exists."""
    best = None
    for d in range(1, int(hw ** 0.5) + 1):
        if hw % d:
            continue
        for cand in (d, hw // d):
            if cand * c * itemsize <= target_bytes and (cand % sub == 0 or cand == hw):
                if best is None or cand > best:
                    best = cand
    return best


# ----------------------------------------------------------------------------
# Wrapper
# ----------------------------------------------------------------------------
def grn(x, gamma, beta, *,
        pack_target_bytes=None,       # None -> derive from VMEM budget
        single_pass_max_bytes=None,   # None -> derive from VMEM budget
        tile_target_bytes=None,       # None -> derive from VMEM budget
        vmem_limit_bytes=None):       # None -> derive from physical VMEM
    """x: (N, H, W, C); gamma, beta: (1, 1, 1, C)."""
    N, H, W, C = x.shape
    HW = H * W
    itemsize = jnp.dtype(x.dtype).itemsize

    # ---- generation-aware VMEM budget -------------------------------------
    cap = _vmem_capacity_bytes()
    if vmem_limit_bytes is None:
        vmem_limit_bytes = min(int(cap * 0.8), 110 * _MiB)   # ~51 MiB v7x, ~102 MiB v5e/v6e
    # Per-block footprint ~= 2x in-buf + 2x out-buf + f32 temps.
    temp_ratio = max(1, 4 // itemsize)
    factor = 4 + 2 * temp_ratio          # f32: 6x, bf16: 8x
    if pack_target_bytes is None:
        pack_target_bytes = min(8 * _MiB, vmem_limit_bytes // factor)
    if single_pass_max_bytes is None:
        single_pass_max_bytes = min(16 * _MiB, vmem_limit_bytes // factor)
    if tile_target_bytes is None:
        tile_target_bytes = min(8 * _MiB if cap > 64 * _MiB else 4 * _MiB,
                                vmem_limit_bytes // 8)

    # ---- lane-dense packing: (N, HW, C) -> (N, HW/k, k*C), k*C % 128 == 0 --
    k = 128 // math.gcd(C, 128)
    if k > 1 and HW % k != 0:
        k = 1
    HWp, Cp = HW // k, k * C

    x3 = x.reshape(N, HWp, Cp)
    g3 = gamma.reshape(1, 1, C)
    b3 = beta.reshape(1, 1, C)
    bp = jnp.tile(b3, (1, 1, k)) if k > 1 else b3   # beta in packed lane layout

    per_image_bytes = HWp * Cp * itemsize

    def cparams(sem):
        return pltpu.CompilerParams(dimension_semantics=sem,
                                    vmem_limit_bytes=int(vmem_limit_bytes))

    if per_image_bytes <= single_pass_max_bytes:
        # ---------------- single-pass path: whole image(s) per grid step ----
        nb = 1
        for d in range(1, N + 1):
            if N % d:
                continue
            if d * per_image_bytes > pack_target_bytes:
                continue
            if N >= 2 and N // d < 2:
                continue   # keep >= 2 parallel grid steps (v7x dual-TC)
            nb = max(nb, d)
        # TODO(synk): for N == 1 on v7x (2 TCs) a parallel spatial split would
        # engage both cores; currently a single grid step is emitted.
        out3 = pl.pallas_call(
            _make_single_kernel(k),
            out_shape=jax.ShapeDtypeStruct((N, HWp, Cp), x.dtype),
            grid_spec=pltpu.PrefetchScalarGridSpec(
                num_scalar_prefetch=0,
                grid=(N // nb,),
                in_specs=[
                    pl.BlockSpec((nb, HWp, Cp), lambda i: (i, 0, 0)),
                    pl.BlockSpec((1, 1, C), lambda i: (0, 0, 0)),
                    pl.BlockSpec((1, 1, Cp), lambda i: (0, 0, 0)),
                ],
                out_specs=pl.BlockSpec((nb, HWp, Cp), lambda i: (i, 0, 0)),
            ),
            compiler_params=cparams(("parallel",)),
        )(x3, g3, bp)
        return out3.reshape(N, H, W, C)

    # ---------------- two-pass tiled fallback (large images) ----------------
    sub = max(8, 32 // itemsize)   # dtype-aware sublane multiple (f32:8, bf16:16, i8:32)
    th = _pick_spatial_tile(HWp, Cp, itemsize, tile_target_bytes, sub)
    hw_pad = HWp
    if th is None:
        # No aligned divisor fits the budget: pad the spatial axis so tiles stay
        # bounded (zeros add nothing to the sum of squares; tail is sliced off).
        th = max(sub, (tile_target_bytes // (Cp * itemsize)) // sub * sub)
        hw_pad = pl.cdiv(HWp, th) * th
        x3 = jnp.pad(x3, ((0, 0), (0, hw_pad - HWp), (0, 0)))
    num_t = hw_pad // th

    # Pass 1: per-(N, C) fused scale = gamma*nx + 1 (lane-packed), accumulated
    # directly into the resident output block across the t axis.
    scale = pl.pallas_call(
        _make_reduce_kernel(k),
        out_shape=jax.ShapeDtypeStruct((N, 1, Cp), jnp.float32),
        grid_spec=pltpu.PrefetchScalarGridSpec(
            num_scalar_prefetch=0,
            grid=(N, num_t),
            in_specs=[
                pl.BlockSpec((1, th, Cp), lambda n, t: (n, t, 0)),
                pl.BlockSpec((1, 1, C), lambda n, t: (0, 0, 0)),
            ],
            out_specs=pl.BlockSpec((1, 1, Cp), lambda n, t: (n, 0, 0)),
        ),
        compiler_params=cparams(("parallel", "arbitrary")),
    )(x3, g3)

    # Pass 2: tiled elementwise apply  y = x * scale + beta.
    out3 = pl.pallas_call(
        _grn_apply_kernel,
        out_shape=jax.ShapeDtypeStruct((N, hw_pad, Cp), x.dtype),
        grid_spec=pltpu.PrefetchScalarGridSpec(
            num_scalar_prefetch=0,
            grid=(N, num_t),
            in_specs=[
                pl.BlockSpec((1, th, Cp), lambda n, t: (n, t, 0)),
                pl.BlockSpec((1, 1, Cp), lambda n, t: (n, 0, 0)),
                pl.BlockSpec((1, 1, Cp), lambda n, t: (0, 0, 0)),
            ],
            out_specs=pl.BlockSpec((1, th, Cp), lambda n, t: (n, t, 0)),
        ),
        compiler_params=cparams(("parallel", "parallel")),
    )(x3, scale, bp)

    if hw_pad != HWp:
        out3 = out3[:, :HWp, :]
    return out3.reshape(N, H, W, C)


# ----------------------------------------------------------------------------
# Reference + test
# ----------------------------------------------------------------------------
def grn_reference(x, gamma, beta):
    xf = x.astype(jnp.float32)
    gx = jnp.sqrt(jnp.sum(xf * xf, axis=(1, 2), keepdims=True))
    nx = gx / (jnp.mean(gx, axis=-1, keepdims=True) + 1e-6)
    return (gamma * (xf * nx) + beta + xf).astype(x.dtype)


if __name__ == "__main__":
    key = jax.random.PRNGKey(0)
    kx, kg, kb = jax.random.split(key, 3)

    N, H, W, C = 2, 16, 16, 32
    x = jax.random.normal(kx, (N, H, W, C), dtype=jnp.float32)

    # Module __init__ uses zeros for gamma/beta; use small deterministic random
    # values so the normalization path is actually exercised.
    gamma = 0.1 * jax.random.normal(kg, (1, 1, 1, C), dtype=jnp.float32)
    beta = 0.1 * jax.random.normal(kb, (1, 1, 1, C), dtype=jnp.float32)

    y_ref = grn_reference(x, gamma, beta)

    # Path 1: single-pass, lane-packed (C=32 -> k=4 -> 128 lanes), auto budgets.
    y1 = jax.block_until_ready(grn(x, gamma, beta))
    assert jnp.allclose(y1, y_ref, atol=1e-5, rtol=1e-5), "single-pass mismatch"

    # Path 2: force the two-pass spatially-tiled path (large-image path).
    y2 = jax.block_until_ready(
        grn(x, gamma, beta,
            single_pass_max_bytes=8 * 1024,
            tile_target_bytes=8 * 1024))
    assert jnp.allclose(y2, y_ref, atol=1e-5, rtol=1e-5), "two-pass mismatch"

    # Path 3: odd H*W with no aligned divisor fitting the budget -> padded
    # two-pass path (hardened fallback).
    x_odd = jax.random.normal(kx, (2, 7, 7, C), dtype=jnp.float32)
    y3_ref = grn_reference(x_odd, gamma, beta)
    y3 = jax.block_until_ready(
        grn(x_odd, gamma, beta,
            single_pass_max_bytes=1024,
            tile_target_bytes=2048))
    assert jnp.allclose(y3, y3_ref, atol=1e-5, rtol=1e-5), "padded two-pass mismatch"

    print("KERNEL_OK")
</pallas_src>

<mosaic_0001>
module attributes {stable_mosaic.version = 11 : i64} {
  func.func @kernel(%arg0: i32, %arg1: memref<1x64x128xf32, #tpu.memory_space<vmem>>, %arg2: memref<1x1x32xf32, #tpu.memory_space<vmem>>, %arg3: memref<1x1x128xf32, #tpu.memory_space<vmem>>, %arg4: memref<1x64x128xf32, #tpu.memory_space<vmem>>) attributes {dimension_semantics = [#tpu.dimension_semantics<parallel>], iteration_bounds = array<i64: 2>, scalar_prefetch = 0 : i64, scratch_operands = 0 : i64, tpu.core_type = #tpu.core_type<tc>, window_params = [{transform_indices = @transform_0, window_bounds = array<i64: 1, 64, 128>}, {pipeline_mode = #tpu.pipeline_mode<synchronous>, transform_indices = @transform_1, window_bounds = array<i64: 1, 1, 32>}, {pipeline_mode = #tpu.pipeline_mode<synchronous>, transform_indices = @transform_2, window_bounds = array<i64: 1, 1, 128>}, {transform_indices = @transform_3, window_bounds = array<i64: 1, 64, 128>}]} {
    %c0 = arith.constant 0 : index
    %c0_0 = arith.constant 0 : index
    %c0_1 = arith.constant 0 : index
    %0 = vector.load %arg1[%c0, %c0_0, %c0_1] : memref<1x64x128xf32, #tpu.memory_space<vmem>>, vector<1x64x128xf32>
    %1 = arith.mulf %0, %0 : vector<1x64x128xf32>
    %cst = arith.constant dense<0.000000e+00> : vector<1x128xf32>
    %2 = vector.multi_reduction <add>, %1, %cst [1] : vector<1x64x128xf32> to vector<1x128xf32>
    %3 = vector.shape_cast %2 : vector<1x128xf32> to vector<1x1x128xf32>
    %4 = vector.shape_cast %3 : vector<1x1x128xf32> to vector<1x4x32xf32>
    %cst_2 = arith.constant dense<0.000000e+00> : vector<1x32xf32>
    %5 = vector.multi_reduction <add>, %4, %cst_2 [1] : vector<1x4x32xf32> to vector<1x32xf32>
    %6 = vector.shape_cast %5 : vector<1x32xf32> to vector<1x1x32xf32>
    %7 = math.sqrt %6 : vector<1x1x32xf32>
    %cst_3 = arith.constant dense<0.000000e+00> : vector<1x1xf32>
    %8 = vector.multi_reduction <add>, %7, %cst_3 [2] : vector<1x1x32xf32> to vector<1x1xf32>
    %9 = vector.shape_cast %8 : vector<1x1xf32> to vector<1x1x1xf32>
    %cst_4 = arith.constant 3.200000e+01 : f32
    %10 = vector.broadcast %cst_4 : f32 to vector<1x1x1xf32>
    %11 = arith.divf %9, %10 : vector<1x1x1xf32>
    %cst_5 = arith.constant 9.99999997E-7 : f32
    %12 = vector.broadcast %cst_5 : f32 to vector<1x1x1xf32>
    %13 = arith.addf %11, %12 : vector<1x1x1xf32>
    %14 = tpu.reciprocal %13 : vector<1x1x1xf32> -> vector<1x1x1xf32>
    %15 = vector.broadcast %14 : vector<1x1x1xf32> to vector<1x1x32xf32>
    %16 = arith.mulf %7, %15 : vector<1x1x32xf32>
    %c0_6 = arith.constant 0 : index
    %c0_7 = arith.constant 0 : index
    %c0_8 = arith.constant 0 : index
    %17 = vector.load %arg2[%c0_6, %c0_7, %c0_8] : memref<1x1x32xf32, #tpu.memory_space<vmem>>, vector<1x1x32xf32>
    %18 = arith.mulf %17, %16 : vector<1x1x32xf32>
    %cst_9 = arith.constant 1.000000e+00 : f32
    %19 = vector.broadcast %cst_9 : f32 to vector<1x1x32xf32>
    %20 = arith.addf %18, %19 : vector<1x1x32xf32>
    %21 = tpu.concatenate %20, %20, %20, %20 in 2 : vector<1x1x32xf32>, vector<1x1x32xf32>, vector<1x1x32xf32>, vector<1x1x32xf32> -> vector<1x1x128xf32>
    %22 = vector.broadcast %21 : vector<1x1x128xf32> to vector<1x64x128xf32>
    %23 = arith.mulf %0, %22 : vector<1x64x128xf32>
    %c0_10 = arith.constant 0 : index
    %c0_11 = arith.constant 0 : index
    %c0_12 = arith.constant 0 : index
    %24 = vector.load %arg3[%c0_10, %c0_11, %c0_12] : memref<1x1x128xf32, #tpu.memory_space<vmem>>, vector<1x1x128xf32>
    %25 = vector.broadcast %24 : vector<1x1x128xf32> to vector<1x64x128xf32>
    %26 = arith.addf %23, %25 : vector<1x64x128xf32>
    %c0_13 = arith.constant 0 : index
    %c0_14 = arith.constant 0 : index
    %c0_15 = arith.constant 0 : index
    %27 = vector.load %arg4[%c0_13, %c0_14, %c0_15] : memref<1x64x128xf32, #tpu.memory_space<vmem>>, vector<1x64x128xf32>
    tpu.vector_store %arg4[%c0_13, %c0_14, %c0_15], %26 {strides = array<i32>} : memref<1x64x128xf32, #tpu.memory_space<vmem>>, vector<1x64x128xf32>,
    return
  }
  func.func @transform_0(%arg0: i32) -> (i32, i32, i32) {
    %c0_i32 = arith.constant 0 : i32
    %c0_i32_0 = arith.constant 0 : i32
    %c0_i32_1 = arith.constant 0 : i32
    return %arg0, %c0_i32, %c0_i32_0 : i32, i32, i32
  }
  func.func @transform_1(%arg0: i32) -> (i32, i32, i32) {
    %c0_i32 = arith.constant 0 : i32
    %c0_i32_0 = arith.constant 0 : i32
    %c0_i32_1 = arith.constant 0 : i32
    %c0_i32_2 = arith.constant 0 : i32
    return %c0_i32, %c0_i32_0, %c0_i32_1 : i32, i32, i32
  }
  func.func @transform_2(%arg0: i32) -> (i32, i32, i32) {
    %c0_i32 = arith.constant 0 : i32
    %c0_i32_0 = arith.constant 0 : i32
    %c0_i32_1 = arith.constant 0 : i32
    %c0_i32_2 = arith.constant 0 : i32
    return %c0_i32, %c0_i32_0, %c0_i32_1 : i32, i32, i32
  }
  func.func @transform_3(%arg0: i32) -> (i32, i32, i32) {
    %c0_i32 = arith.constant 0 : i32
    %c0_i32_0 = arith.constant 0 : i32
    %c0_i32_1 = arith.constant 0 : i32
    return %arg0, %c0_i32, %c0_i32_0 : i32, i32, i32
  }
}

</mosaic_0001>

<bundles_post_ra>
// kernel: tpu_custom_call.1
= control target key start
LH: loop header
LB: loop body
LE: loop exit
PB: predicated region body
PF: predicated region fallthrough
CT: control target
= control target key end

     0   :  { %8 = vsyncpa [#allocation3], 0  ;;  %s833_s0 = inlined_call_operand.hbm [shape: f32[2,64,128], index: 0, kind: input, shape index: {}]   ;;  %s834_s1 = inlined_call_operand.vmem [shape: f32[1,1,32], index: 1, kind: input, shape index: {}]   ;;  %s835_s2 = inlined_call_operand.vmem [shape: f32[1,1,128], index: 2, kind: input, shape index: {}]   ;;  %s836_s3 = inlined_call_operand.hbm [shape: f32[2,64,128], index: 3, kind: output, shape index: {}]  }
   0x1   :  { %10 = vsyncpa [#allocation3 + $0x1], 0 }
   0x2   :  { %11 = vsyncpa [#allocation4], 0 }
   0x3   :  { %13 = vsyncpa [#allocation4 + $0x1], 0  ;;  %s621_s12 = smov 0   ;;  %s623_s13 = smov 0  }
   0x4   :  { %s625_s14 = smov 0   ;;  %s627_s15 = smov 0  }
   0x5 LB: > { %s642_s16 = sadd.s32 4294967295, %s588_s15   ;;  %s420_s17 = sadd.s32 4294967294, %s588_s15   ;;  %s588_s15 = sphi %s627_s15, %s851_s15   ;;  %s584_s14 = sphi %s625_s14, %s850_s14   ;;  %s580_s13 = sphi %s623_s13, %s849_s13   ;;  %s576_s12 = sphi %s621_s12, %s848_s12  }
   0x6   : > { %s646_s18 = sadd.s32 1, %s588_s15   ;;  %s26_s19 = sadd.s32 1, %s584_s14 }
   0x7   : > { %s23_s20 = ssub.s32 %s588_s15, %s646_s18  ;;  %p33_p0 = scmp.ne.s32.totalorder %s584_s14, %s580_s13 }
   0x8   : > { %p24_p1 = scmp.eq.s32.totalorder %s23_s20, 0  ;;  %p34_p2 = scmp.eq.s32.totalorder %s588_s15, 0 }
   0x9   : > { %p39_p3 = scmp.ne.s32.totalorder %s580_s13, %s576_s12  ;;  %p40_p4 = scmp.eq.s32.totalorder %s642_s16, 0 }
   0xa   : > { %s658_s21 = scalar_select %p24_p1, %s584_s14, %s26_s19  }
   0xb   : > { %p660_p5 = por %p34_p2, %p33_p0  ;;  %p664_p6 = por %p40_p4, %p39_p3 }
   0xc   : > { %p105_p7 = scmp.eq.s32.totalorder %s642_s16, 1  ;;  %p111_p8 = scmp.eq.s32.totalorder %s420_s17, 1 }
   0xd   : > { %s840_s23 = scalar_select %p664_p6, 1, 0 }
   0xe   : > { %p449_p10 = scmp.lt.s32.totalorder %s588_s15, 2  ;;  %p671_p11 = por %p105_p7, %p33_p0 }
   0xf   : > { %p675_p12 = por %p111_p8, %p39_p3  ;;  %s137_s26 = sand.u32 1, %s584_s14  }
  0x10   : > { %s841_s24 = scalar_select %p671_p11, 1, 0 }
  0x11   : > { %s842_s25 = scalar_select %p675_p12, 1, 0 }
  0x12   : > { %s435_s27 = sshll.u32 %s588_s15, 10  ;;  %s423_s28 = sshll.u32 %s137_s26, 6 }
  0x13   : > { %s684_s4 = scalar_lea.hbm %s833_s0, %s435_s27  ;;  %s141_s5 = scalar_lea.vmem [#allocation2], %s423_s28 }
  0x14   : > { %s148_s6 = sshll.u32 %s141_s5, 4  ;;  %p688_p13 = pnand %p449_p10, %p660_p5  ;;  %s692_s6 = int_to_ptr.vmem [resolvable:$true] %s148_s6 }
  0x15   : > { %s694_s8 = scalar_lea.sflag [#allocation3], %s137_s26  ;;  %s496_s9 = scalar_lea.hbm %s684_s4, 1024 }
  0x16   : > { %p497_p0 = scmp.ne.s32.totalorder %s684_s4, %s496_s9  ;;  %p498_p1 = pneg %p688_p13 }
  0x17   : > { %s501_s17 = scalar_lea.hbm %s833_s0, 2048  ;;  %p502_p4 = scmp.lt.s32.totalorder %s684_s4, %s833_s0 }
  0x18   : > { %p499_p2 = pnand %p498_p1, %p497_p0  ;;  %p503_p5 = scmp.lt.s32.totalorder %s501_s17, %s496_s9 }
  0x1a   : > { %p500_p3 = pneg %p499_p2  ;;  %p504_p7 = por %p503_p5, %p502_p4 }
  0x1c   : > { %p505_p8 = pnand %p504_p7, %p500_p3 }
  0x1e   : > { %508 = shalt.err (!%p505_p8)
}
  0x1f   : > { %s509_s22 = scalar_lea.vmem %s692_s6, 1024  ;;  %s590_s26 = smov [#allocation2]  }
  0x20   : > { %p510_p10 = scmp.ne.s32.totalorder %s692_s6, %s509_s22  ;;  %s514_s27 = sshll.u32 %s590_s26, 4  ;;  %s515_s27 = int_to_ptr.vmem [resolvable:$false] %s514_s27 }
  0x21   : > { %s516_s28 = scalar_lea.vmem %s515_s27, 2048  ;;  %p517_p2 = scmp.lt.s32.totalorder %s692_s6, %s515_s27 }
  0x22   : > { %p512_p9 = pnand %p510_p10, %p498_p1  ;;  %p518_p12 = scmp.lt.s32.totalorder %s516_s28, %s509_s22 }
  0x24   : > { %p513_p0 = pneg %p512_p9  ;;  %p519_p11 = por %p518_p12, %p517_p2 }
  0x26   : > { %p520_p6 = pnand %p519_p11, %p513_p0 }
  0x28   : > { %523 = shalt.err (!%p520_p6)
}
  0x29   : > { %s591_s29 = smov 128   ;;  %s592_s30 = smov 8  }
  0x2a   : > { %444 = dma.hbm_to_vmem [thread:$0]  (!%p688_p13), %s684_s4, 1024, %s692_s6, %s694_s8, %s591_s29, %s591_s29, %s592_s30  }
  0x2b   : > { %p426_p9 = scmp.ge.s32.totalorder %s588_s15, 1  ;;  %p156_p1 = scmp.lt.s32.totalorder %s588_s15, 3 }
  0x2d   : > { %p157_p3 = pnand %p426_p9, %p156_p1 }
  0x2e   : > { %s718_s5 = sand.u32 (!%p157_p3), 1, %s580_s13   ;;  %p844_p6 = scmp.ne.s32.totalorder (!%p157_p3), %s840_s23, 0 }
  0x2f   : > { %160 = sbr.rel (%p157_p3) target bundleno = 552 (0x228), region = 32  ;;  %s427_s9 = sshll.u32 (!%p157_p3), %s718_s5, 6 }
  0x30   : > { %s163_s10 = scalar_lea.sflag (!%p157_p3), [#allocation3], %s718_s5  ;;  %s166_s11 = scalar_lea.vmem (!%p157_p3), [#allocation2], %s427_s9 }
  0x34   : > { %567 = dma.done.wait (%p844_p6), %s163_s10, 1024  }
  0x35   : > { %569 = vsyncadd (%p844_p6), %s163_s10, 4294966272  ;;  %v728_v0 = vld [vmem:[%s166_s11] sm:$0xff]  ;;  %v730_v1 = vld [vmem:[%s166_s11 + $0x8] sm:$0xff]  ;;  %s593_s23 = smov 32   ;;  %s594_s4 = smov 96   ;;  %v232_v31 = vlaneseq  ;;  %vm252_vm0 = vcmask 257024  }
  0x36   : > { %v732_v2 = vld [vmem:[%s166_s11 + $0x10] sm:$0xff]  ;;  %v734_v3 = vld [vmem:[%s166_s11 + $0x18] sm:$0xff]  ;;  %v197_v4 = vmul.f32 %v728_v0, %v728_v0  ;;  %v198_v5 = vmul.f32 %v730_v1, %v730_v1  ;;  %v742_v7 = vld [vmem:[%s166_s11 + $0x20] sm:$0xff]  ;;  %s595_s6 = smov 64   ;;  %v596_v29 = vmov 1983009808  }
  0x37   : > { %v199_v6 = vmul.f32 %v732_v2, %v732_v2  ;;  %v200_v8 = vmul.f32 %v734_v3, %v734_v3  ;;  %v746_v10 = vld [vmem:[%s166_s11 + $0x28] sm:$0xff]  ;;  %v201_v11 = vmul.f32 %v742_v7, %v742_v7  ;;  %v750_v13 = vld [vmem:[%s166_s11 + $0x30] sm:$0xff]  ;;  %v754_v16 = vld [vmem:[%s166_s11 + $0x38] sm:$0xff]  ;;  %v230_v30 = vunpack.c.l.s4 %v596_v29  ;;  %s436_s20 = sshll.u32 %s642_s16, 10  ;;  %s188_s22 = scalar_lea.vmem [#allocation5], %s427_s9 }
  0x38   : > { %v205_v9 = vadd.f32 %v198_v5, %v197_v4  ;;  %v202_v14 = vmul.f32 %v746_v10, %v746_v10  ;;  %v203_v17 = vmul.f32 %v750_v13, %v750_v13  ;;  %v204_v19 = vmul.f32 %v754_v16, %v754_v16  ;;  %v276_v5 = vld [vmem:[%s834_s1] sm:$0x1]  ;;  %s347_s26 = sshll.u32 %s188_s22, 4  ;;  %s788_s28 = scalar_lea.hbm %s836_s3, %s436_s20  ;;  %s790_s26 = int_to_ptr.vmem [resolvable:$true] %s347_s26 }
  0x39   : > { %v231_v32 = vunpack.c.0.s8 %v230_v30  ;;  %v233_v33 = vshrl.u32 %v232_v31, 7  ;;  %v597_v34 = vmov 1934713408   ;;  %vm267_vm2 = vcmask 261120   ;;  %s334_s29 = scalar_lea.sflag [#allocation4], %s718_s5  ;;  %s524_s30 = scalar_lea.vmem %s790_s26, 1024 }
  0x3a   : > { %v206_v12 = vadd.f32 %v205_v9, %v199_v6  ;;  %v246_v35 = vunpack.c.l.s4 %v597_v34  ;;  %vm294_vm4 = vcmask 523264   ;;  %vm296_vm5 = vcmask 785408   ;;  %p525_p11 = scmp.ne.s32.totalorder %s790_s26, %s524_s30  ;;  %p845_p12 = scmp.ne.s32.totalorder %s841_s24, 0 }
  0x3b   : > { %v234_v38 = vsub.s32 %v231_v32, %v233_v33  ;;  %v282_v9 = vsub.s32 0, %v233_v33  ;;  %s598_s9 = smov [#allocation5]  }
  0x3c   : > { %v207_v15 = vadd.f32 %v206_v12, %v200_v8  ;;  %v247_v40 = vunpack.c.0.s8 %v246_v35  ;;  %p526_p13 = pnand %p525_p11, %p845_p12  ;;  %s528_s10 = sshll.u32 %s598_s9, 4  ;;  %s529_s10 = int_to_ptr.vmem [resolvable:$false] %s528_s10 }
  0x3d   : > { %s530_s11 = scalar_lea.vmem %s529_s10, 2048  ;;  %p531_p5 = scmp.lt.s32.totalorder %s790_s26, %s529_s10 }
  0x3e   : > { %v208_v18 = vadd.f32 %v207_v15, %v201_v11  ;;  %v250_v44 = vsub.s32 %v247_v40, %v233_v33  ;;  %p527_p4 = pneg %p526_p13  ;;  %p532_p7 = scmp.lt.s32.totalorder %s530_s11, %s524_s30 }
  0x40   : > { %v209_v20 = vadd.f32 %v208_v18, %v202_v14  ;;  %p533_p8 = por %p532_p7, %p531_p5 }
  0x42   : > { %v210_v21 = vadd.f32 %v209_v20, %v203_v17  ;;  %p534_p10 = pnand %p533_p8, %p527_p4 }
  0x44   : > { %v211_v22 = vadd.f32 %v210_v21, %v204_v19 }
  0x46   : > { %v212_v23 = vrot.slane %v211_v22, 4 }
  0x48   : > { %v213_v24 = vadd.f32 %v212_v23, %v211_v22  ;;  %v429_v22 = vld [vmem:[%s835_s2] ss:$0 sm:$0xff] }
  0x4a   : > { %v214_v25 = vrot.slane %v213_v24, 2 }
  0x4c   : > { %v215_v26 = vadd.f32 %v214_v25, %v213_v24 }
  0x4e   : > { %v216_v27 = vrot.slane %v215_v26, 1 }
  0x50   : > { %v217_v28 = vadd.f32 %v216_v27, %v215_v26 }
  0x52   : > { %225 = vrot.lane.b32.xlu1 %v217_v28, %s593_s23  ;;  %219 = vrot.lane.b32.xlu0 %v217_v28, %s594_s4 }
  0x56   : > { %222 = vrot.lane.b32.xlu0 %v217_v28, %s595_s6 }
  0xc4   : > { %v226_v36 = vpop.permute.xlu1 %225  ;;  %v220_v37 = vpop.permute.xlu0 %219 }
  0xc5   : > { %v236_v39 = vcombine.low %v220_v37, %v226_v36 }
  0xc7   : > { %v243_v43 = vrot.slane %v236_v39, %v234_v38 }
  0xc8   : > { %v223_v41 = vpop.permute.xlu0 %222 }
  0xc9   : > { %v228_v42 = vcombine.low %v217_v28, %v223_v41 }
  0xcb   : > { %v235_v45 = vrot.slane %v228_v42, %v234_v38 }
  0xcd   : > { %v244_v46 = vcombine.low %v235_v45, %v243_v43 }
  0xcf   : > { %v251_v47 = vrot.slane %v244_v46, %v250_v44 }
  0xd1   : > { %v253_v48 = vsel %vm252_vm0, %v251_v47, 0.0 }
  0xd2   : > { %v254_v49 = vrot.slane %v253_v48, 4 }
  0xd4   : > { %v255_v50 = vadd.f32 %v254_v49, %v253_v48 }
  0xd6   : > { %v256_v51 = vrot.slane %v255_v50, 2 }
  0xd8   : > { %v257_v52 = vadd.f32 %v256_v51, %v255_v50 }
  0xda   : > { %v258_v53 = vrot.slane %v257_v52, 1 }
  0xdc   : > { %v259_v54 = vadd.f32 %v258_v53, %v257_v52 }
  0xde   : > { %492 = vrsqrt.f32 %v259_v54  ;;  %vm262_vm1 = vcmp.eq.f32.partialorder %v259_v54, inf  ;;  %v265_v57 = vand.u32 2147483648, %v259_v54  ;;  %vm264_vm3 = vcmp.eq.f32.partialorder %v259_v54, 0.0 }
  0xeb   : > { %v493_v55 = vpop.eup %492 }
  0xec   : > { %v261_v56 = vmul.f32 %v493_v55, %v259_v54 }
  0xee   : > { %v263_v58 = vsel %vm262_vm1, %v259_v54, %v261_v56 }
  0xef   : > { %v266_v59 = vsel %vm264_vm3, %v265_v57, %v263_v58 }
  0xf0   : > { %v268_v60 = vsel %vm267_vm2, %v266_v59, 0.0 }
  0xf1   : > { %269 = vadd.xlane.f32.xlu1 %v268_v60 }
 0x17a   : > { %v270_v61 = vpop.xlane.xlu1 %269 }
 0x17b   : > { %v272_v62 = vmul.f32 0.03125, %v270_v61 }
 0x17d   : > { %v273_v63 = vadd.f32 1e-06, %v272_v62 }
 0x17f   : > { %494 = vrcp.f32 %v273_v63 }
 0x18c   : > { %v495_v4 = vpop.eup %494 }
 0x18d   : > { %v275_v6 = vmul.f32 %v495_v4, %v266_v59 }
 0x18f   : > { %v277_v8 = vmul.f32 %v276_v5, %v275_v6 }
 0x191   : > { %v278_v11 = vadd.f32 1.0, %v277_v8 }
 0x193   : > { %v283_v12 = vrot.slane %v278_v11, %v282_v9 }
 0x195   : > { %284 = vrot.lane.b32.xlu0 %v283_v12, %s593_s23 }
 0x199   : > { %287 = vrot.lane.b32.xlu0 %v283_v12, %s595_s6 }
 0x19d   : > { %290 = vrot.lane.b32.xlu0 %v283_v12, %s594_s4 }
 0x207   : > { %v285_v14 = vpop.permute.xlu0 %284 }
 0x208   : > { %v293_v17 = vsel %vm267_vm2, %v278_v11, %v285_v14 }
 0x20b   : > { %v288_v15 = vpop.permute.xlu0 %287 }
 0x20c   : > { %v295_v18 = vsel %vm294_vm4, %v293_v17, %v288_v15 }
 0x20f   : > { %v291_v19 = vpop.permute.xlu0 %290 }
 0x210   : > { %v297_v20 = vsel %vm296_vm5, %v295_v18, %v291_v19 }
 0x211   : > { %v301_v21 = vrot.slane %v297_v20, %v282_v9 }
 0x213   : > { %v302_v23 = vmul.f32 %v301_v21, %v728_v0  ;;  %v303_v24 = vmul.f32 %v301_v21, %v730_v1  ;;  %v304_v25 = vmul.f32 %v301_v21, %v732_v2  ;;  %v305_v26 = vmul.f32 %v301_v21, %v734_v3 }
 0x214   : > { %v306_v27 = vmul.f32 %v301_v21, %v742_v7  ;;  %v307_v28 = vmul.f32 %v301_v21, %v746_v10  ;;  %v308_v29 = vmul.f32 %v301_v21, %v750_v13  ;;  %v309_v30 = vmul.f32 %v301_v21, %v754_v16 }
 0x215   : > { %v317_v31 = vadd.f32 %v429_v22, %v302_v23  ;;  %v318_v32 = vadd.f32 %v429_v22, %v303_v24  ;;  %v319_v33 = vadd.f32 %v429_v22, %v304_v25  ;;  %v320_v34 = vadd.f32 %v429_v22, %v305_v26 }
 0x216   : > { %v321_v0 = vadd.f32 %v429_v22, %v306_v27  ;;  %v322_v1 = vadd.f32 %v429_v22, %v307_v28  ;;  %v323_v2 = vadd.f32 %v429_v22, %v308_v29  ;;  %v324_v3 = vadd.f32 %v429_v22, %v309_v30 }
 0x217   : > { %325 = vst [vmem:[%s188_s22] sm:$0xff] %v317_v31  ;;  %326 = vst [vmem:[%s188_s22 + $0x8] sm:$0xff] %v318_v32 }
 0x218   : > { %327 = vst [vmem:[%s188_s22 + $0x10] sm:$0xff] %v319_v33  ;;  %328 = vst [vmem:[%s188_s22 + $0x18] sm:$0xff] %v320_v34 }
 0x219   : > { %329 = vst [vmem:[%s188_s22 + $0x20] sm:$0xff] %v321_v0  ;;  %330 = vst [vmem:[%s188_s22 + $0x28] sm:$0xff] %v322_v1 }
 0x21a   : > { %331 = vst [vmem:[%s188_s22 + $0x30] sm:$0xff] %v323_v2  ;;  %332 = vst [vmem:[%s188_s22 + $0x38] sm:$0xff] %v324_v3 }
 0x21b   : > { %537 = shalt.err (!%p534_p10)
}
 0x21c   : > { %s538_s23 = scalar_lea.hbm %s788_s28, 1024  ;;  %s542_s7 = scalar_lea.hbm %s836_s3, 2048 }
 0x21d   : > { %p539_p0 = scmp.ne.s32.totalorder %s788_s28, %s538_s23  ;;  %p543_p1 = scmp.lt.s32.totalorder %s788_s28, %s836_s3 }
 0x21e   : > { %p544_p3 = scmp.lt.s32.totalorder %s542_s7, %s538_s23 }
 0x21f   : > { %p540_p2 = pnand %p539_p0, %p845_p12 }
 0x220   : > { %p545_p6 = por %p544_p3, %p543_p1 }
 0x221   : > { %p541_p9 = pneg %p540_p2 }
 0x223   : > { %p546_p11 = pnand %p545_p6, %p541_p9 }
 0x225   : > { %549 = shalt.err (!%p546_p11)
}
 0x226   : > { %s599_s19 = smov 128   ;;  %s600_s20 = smov 8  }
 0x227   : > { %439 = dma.vmem_to_hbm [thread:$0]  (%p845_p12), %s790_s26, 1024, %s788_s28, %s334_s29, %s599_s19, %s599_s19, %s600_s20  }
 0x228 PF: > { %s362_s22 = sand.u32 1, %s576_s12   ;;  %p846_p13 = scmp.ne.s32.totalorder %s842_s25, 0 }
 0x229   : > { %p847_p4 = scmp.ge.s32.totalorder %s588_s15, 2  ;;  %s363_s16 = scalar_lea.sflag [#allocation4], %s362_s22 }
 0x22b   : > { %p446_p5 = pnand %p847_p4, %p846_p13 }
 0x22d   : > { %p447_p7 = pneg %p446_p5 }
 0x22f   : > { %571 = dma.done.wait (%p447_p7), %s363_s16, 1024  }
 0x230   : > { %573 = vsyncadd (%p447_p7), %s363_s16, 4294966272  ;;  %p16_p8 = scmp.ge.s32.totalorder %s646_s18, 4   ;;  %s848_s12 = smov %s580_s13 }
 0x231   : > { %s849_s13 = smov %s584_s14  ;;  %s850_s14 = smov %s658_s21 }
 0x232   : > { %s851_s15 = smov %s646_s18  ;;  %18 = sbr.rel (!%p16_p8) target bundleno = 5 (0x5), region = 77 }
 0x237   :  { %368 = vsyncpa [#allocation3], 1 }
 0x238   :  { %370 = vsyncpa [#allocation3 + $0x1], 1 }
 0x239   :  { %371 = vsyncpa [#allocation4], 1 }
 0x23a   :  { %373 = vsyncpa [#allocation4 + $0x1], 1 }

</bundles_post_ra>
